<compile_context>
chip_gen: v7x
topology: tpu7x:2x2x1
jax: 0.10.0
libtpu: 0.0.40
codegen_flags: <defaults>
</compile_context>

<pallas_src>
import functools

import numpy as np
import jax
import jax.numpy as jnp
from jax.experimental import pallas as pl
from jax.experimental.pallas import tpu as pltpu

NEG_BIG = -1.0e30  # plain Python float: Pallas kernels must not capture jax-array constants


def linear_score_kernel(x_ref, w_ref, wb_ref, a_cat_ref, sb_ref, h_ref, s_ref):
    """H = X@W + b plus both per-node attention-score halves in ONE skinny matmul.
    s[:, 0] = H @ a_dst + attn_b   (destination half, bias folded in)
    s[:, 1] = H @ a_src            (source half)
    """
    h = jnp.dot(x_ref[...], w_ref[...], preferred_element_type=jnp.float32) + wb_ref[...]
    h_ref[...] = h.astype(h_ref.dtype)   # bf16 by default -> halves kernel-2's H stream
    s_ref[...] = jnp.dot(h, a_cat_ref[...], preferred_element_type=jnp.float32) + sb_ref[...]


def attention_kernel(nz_ref, s_dst_ref, s_src_ref, h_ref, adj_ref, out_ref,
                     m_scr, l_scr, acc_scr):
    """One (dst-block i, src-block j) tile of edge-softmax + aggregation (online softmax).

    nz_ref is a scalar-prefetched [nbm, nbs] int32 bitmap of tiles that contain at least
    one edge; empty tiles are skipped entirely (exactly equivalent since they contribute
    p == 0 and the correction factor only rescales zero accumulators)."""
    i = pl.program_id(0)
    j = pl.program_id(1)

    @pl.when(j == 0)
    def _init():
        m_scr[...] = jnp.full(m_scr.shape, NEG_BIG, jnp.float32)
        l_scr[...] = jnp.zeros(l_scr.shape, jnp.float32)
        acc_scr[...] = jnp.zeros(acc_scr.shape, jnp.float32)

    @pl.when(nz_ref[i, j] != 0)
    def _compute():
        adj_f = adj_ref[...].astype(jnp.float32)        # int8 {0,1} -> f32

        # score[d, s] = leaky_relu(s_dst[d] + s_src[s] + attn_b, 0.2); bias already in s_dst.
        scores = s_dst_ref[...] + s_src_ref[...]        # [TM,1] + [1,TS] -> [TM,TS]
        scores = jnp.maximum(scores, 0.2 * scores)      # leaky_relu without compare+select
        # Mask via a single FMA (for the running max only); VALU is the likely binding slot.
        masked = scores + (adj_f - 1.0) * 1.0e30

        m_prev = m_scr[...]
        m_new = jnp.maximum(m_prev, jnp.max(masked, axis=1, keepdims=True))
        corr = jnp.exp(m_prev - m_new)
        # Multiply by adj_f for exact zeroing of non-edges (also keeps zero-in-degree
        # destination rows exactly zero).
        p = jnp.exp(masked - m_new) * adj_f

        l_scr[...] = corr * l_scr[...] + jnp.sum(p, axis=1, keepdims=True)
        acc_scr[...] = corr * acc_scr[...] + jnp.dot(
            p.astype(h_ref.dtype), h_ref[...], preferred_element_type=jnp.float32)
        m_scr[...] = m_new

    @pl.when(j == pl.num_programs(1) - 1)
    def _finalize():
        denom = l_scr[...]
        safe = jnp.where(denom > 0.0, denom, 1.0)   # zero-in-degree rows -> zero output
        inv = pl.reciprocal(safe, approx=True)      # EUP slot (otherwise only exp uses it)
        inv = inv * (2.0 - safe * inv)              # one Newton step -> ~f32 accuracy
        out_ref[...] = (acc_scr[...] * inv).astype(out_ref.dtype)


def _round_up(x, m):
    return ((x + m - 1) // m) * m


@functools.partial(jax.jit, static_argnames=("tile_m", "tile_s", "agg_dtype"))
def global_attention_layer(features, w, wb, a_src, a_dst, ab, adj,
                           *, tile_m=512, tile_s=1024, agg_dtype=jnp.bfloat16):
    """features [N,F_in], w [F_in,F_out] (=W.weight^T), wb [1,F_out], a_src/a_dst [F_out,1],
    ab [1,1], adj [N,N] (nonzero => edge src->dst, row = dst).  Returns [N, F_out]."""
    n, f_in = features.shape
    f_out = w.shape[1]
    fp = _round_up(f_out, 128)                       # lane-dense output / aggregation

    # ---- tile sizing: clamp to the problem; keep >=2 dst blocks when possible so the
    #      "parallel" dst axis can shard across v7x's two TensorCores.
    rm = _round_up(n, 8)
    tm = min(tile_m, rm)
    if tm == rm and rm >= 16:
        tm = _round_up((n + 1) // 2, 8)
    ts = min(tile_s, _round_up(n, 128))

    n_pad_m = _round_up(n, tm)                       # dst extent (independent padding)
    n_pad_s = _round_up(n, ts)                       # src extent (independent padding)
    n_pad_1 = _round_up(max(n_pad_m, n_pad_s), tm)   # node extent covered by kernel 1

    f32 = jnp.float32
    feat_p = jnp.pad(features.astype(f32), ((0, n_pad_1 - n), (0, 0)))
    w_p = jnp.pad(w.astype(f32), ((0, 0), (0, fp - f_out)))
    wb_p = jnp.pad(wb.astype(f32).reshape(1, f_out), ((0, 0), (0, fp - f_out)))
    a_dst_p = jnp.pad(a_dst.astype(f32).reshape(f_out, 1), ((0, fp - f_out), (0, 0)))
    a_src_p = jnp.pad(a_src.astype(f32).reshape(f_out, 1), ((0, fp - f_out), (0, 0)))
    a_cat = jnp.concatenate([a_dst_p, a_src_p], axis=1)                       # [fp, 2]
    sb = jnp.concatenate([ab.astype(f32).reshape(1, 1),
                          jnp.zeros((1, 1), f32)], axis=1)                    # [1, 2]
    adj_p = jnp.pad((adj != 0).astype(jnp.int8),
                    ((0, n_pad_m - n), (0, n_pad_s - n)))                     # int8 0/1

    # ---- kernel 1: linear transform + per-node score halves (computed once) ----
    h, s = pl.pallas_call(
        linear_score_kernel,
        grid=(n_pad_1 // tm,),
        in_specs=[
            pl.BlockSpec((tm, f_in), lambda i: (i, 0)),
            pl.BlockSpec((f_in, fp), lambda i: (0, 0)),
            pl.BlockSpec((1, fp), lambda i: (0, 0)),
            pl.BlockSpec((fp, 2), lambda i: (0, 0)),
            pl.BlockSpec((1, 2), lambda i: (0, 0)),
        ],
        out_specs=[
            pl.BlockSpec((tm, fp), lambda i: (i, 0)),
            pl.BlockSpec((tm, 2), lambda i: (i, 0)),
        ],
        out_shape=[
            jax.ShapeDtypeStruct((n_pad_1, fp), agg_dtype),
            jax.ShapeDtypeStruct((n_pad_1, 2), f32),
        ],
        compiler_params=pltpu.CompilerParams(dimension_semantics=("parallel",)),
    )(feat_p, w_p, wb_p, a_cat, sb)

    # Adapt kernel-1 outputs to the independently padded dst/src extents (tiny XLA ops).
    s_dst = s[:n_pad_m, 0:1]                         # [n_pad_m, 1]  dst half (+attn_b)
    s_src = s[:n_pad_s, 1:2].reshape(1, n_pad_s)     # [1, n_pad_s]  lane-dense src row
    h_s = h[:n_pad_s]                                # [n_pad_s, fp]

    # Per-tile "has edges" bitmap (scalar-prefetched into SMEM); empty tiles skip all work.
    # For very large graphs this bitmap should itself be chunked to respect SMEM limits.
    nbm, nbs = n_pad_m // tm, n_pad_s // ts
    nz = jnp.any((adj_p != 0).reshape(nbm, tm, nbs, ts), axis=(1, 3)).astype(jnp.int32)

    # ---- kernel 2: tiled edge-softmax + aggregation with online (flash-style) softmax ----
    grid_spec = pltpu.PrefetchScalarGridSpec(
        num_scalar_prefetch=1,
        grid=(nbm, nbs),
        in_specs=[
            pl.BlockSpec((tm, 1), lambda i, j, nz_ref: (i, 0)),      # s_dst (resident over j)
            pl.BlockSpec((1, ts), lambda i, j, nz_ref: (0, j)),      # s_src row
            pl.BlockSpec((ts, fp), lambda i, j, nz_ref: (j, 0)),     # H source block (bf16)
            pl.BlockSpec((tm, ts), lambda i, j, nz_ref: (i, j)),     # int8 adjacency tile
        ],
        out_specs=pl.BlockSpec((tm, fp), lambda i, j, nz_ref: (i, 0)),
        scratch_shapes=[
            pltpu.VMEM((tm, 1), f32),    # running max
            pltpu.VMEM((tm, 1), f32),    # running denominator
            pltpu.VMEM((tm, fp), f32),   # running accumulator
        ],
    )
    out_p = pl.pallas_call(
        attention_kernel,
        grid_spec=grid_spec,
        out_shape=jax.ShapeDtypeStruct((n_pad_m, fp), f32),
        compiler_params=pltpu.CompilerParams(
            dimension_semantics=("parallel", "arbitrary"),
            vmem_limit_bytes=48 * 1024 * 1024,   # ~13 MiB/step actual; safe on v7x's 64 MiB
        ),
    )(nz, s_dst, s_src, h_s, adj_p)

    return out_p[:n, :f_out]


def reference(features, w, wb, a_src, a_dst, ab, src, dst, n):
    features = np.asarray(features, np.float64)
    w = np.asarray(w, np.float64)
    h = features @ w + np.asarray(wb, np.float64)
    attn_w = np.concatenate([np.asarray(a_src, np.float64), np.asarray(a_dst, np.float64)], axis=0)
    cat = np.concatenate([h[src], h[dst]], axis=-1)
    s = (cat @ attn_w)[:, 0] + float(ab)
    s = np.where(s >= 0, s, 0.2 * s)
    out = np.zeros((n, h.shape[1]), dtype=np.float64)
    for d in range(n):
        idx = np.where(dst == d)[0]
        if idx.size == 0:
            continue
        e = np.exp(s[idx] - s[idx].max())
        a = e / e.sum()
        out[d] = (a[:, None] * h[src[idx]]).sum(axis=0)
    return out


if __name__ == "__main__":
    N, F_IN, F_OUT = 8, 16, 32

    key = jax.random.PRNGKey(0)
    k_x, k_w, k_b, k_a = jax.random.split(key, 4)

    # deterministic xavier-uniform style init (module shapes from __init__)
    bound_w = float(np.sqrt(6.0 / (F_IN + F_OUT)))
    w = jax.random.uniform(k_w, (F_IN, F_OUT), jnp.float32, -bound_w, bound_w)   # W.weight^T
    bound_b = float(1.0 / np.sqrt(F_IN))
    wb = jax.random.uniform(k_b, (1, F_OUT), jnp.float32, -bound_b, bound_b)     # W.bias
    bound_a = float(np.sqrt(6.0 / (2 * F_OUT + 1)))
    attn_w = jax.random.uniform(k_a, (2 * F_OUT, 1), jnp.float32, -bound_a, bound_a)
    a_src, a_dst = attn_w[:F_OUT], attn_w[F_OUT:]
    ab = jnp.zeros((1, 1), jnp.float32)                                          # attn_b

    features = jax.random.normal(k_x, (N, F_IN), jnp.float32)

    # deterministic graph: node d receives edges from (d+1)%N, (d+3)%N, (d+5)%N;
    # node 0 is left with zero in-degree to exercise that path.
    src_list, dst_list = [], []
    for d in range(N):
        if d == 0:
            continue
        for off in (1, 3, 5):
            src_list.append((d + off) % N)
            dst_list.append(d)
    src = np.array(src_list, np.int32)
    dst = np.array(dst_list, np.int32)
    adj_np = np.zeros((N, N), np.int8)       # int8 adjacency: 4x fewer HBM bytes than f32
    adj_np[dst, src] = 1
    adj = jnp.asarray(adj_np)

    ref = reference(np.asarray(features), np.asarray(w), np.asarray(wb),
                    np.asarray(a_src), np.asarray(a_dst), 0.0, src, dst, N)

    # exact path (f32 H / f32 MXU inputs): tight tolerance
    out_f32 = global_attention_layer(features, w, wb, a_src, a_dst, ab, adj,
                                     agg_dtype=jnp.float32)
    out_f32 = jax.block_until_ready(out_f32)
    assert out_f32.shape == (N, F_OUT)
    assert np.allclose(np.asarray(out_f32), ref, rtol=1e-3, atol=1e-3), "f32 mismatch vs reference"

    # production default (bf16 H stream + bf16 MXU inputs): bf16-appropriate tolerance
    out_bf16 = global_attention_layer(features, w, wb, a_src, a_dst, ab, adj)
    out_bf16 = jax.block_until_ready(out_bf16)
    assert out_bf16.shape == (N, F_OUT)
    assert np.allclose(np.asarray(out_bf16), ref, rtol=2e-2, atol=2e-2), "bf16 mismatch vs reference"

    print("KERNEL_OK")
</pallas_src>

<mosaic_0001>
module attributes {stable_mosaic.version = 11 : i64} {
  func.func @linear_score_kernel(%arg0: i32, %arg1: memref<8x16xf32, #tpu.memory_space<vmem>>, %arg2: memref<16x128xf32, #tpu.memory_space<vmem>>, %arg3: memref<1x128xf32, #tpu.memory_space<vmem>>, %arg4: memref<128x2xf32, #tpu.memory_space<vmem>>, %arg5: memref<1x2xf32, #tpu.memory_space<vmem>>, %arg6: memref<8x128xf32, #tpu.memory_space<vmem>>, %arg7: memref<8x2xf32, #tpu.memory_space<vmem>>) attributes {dimension_semantics = [#tpu.dimension_semantics<parallel>], iteration_bounds = array<i64: 16>, scalar_prefetch = 0 : i64, scratch_operands = 0 : i64, tpu.core_type = #tpu.core_type<tc>, window_params = [{transform_indices = @transform_0, window_bounds = array<i64: 8, 16>}, {pipeline_mode = #tpu.pipeline_mode<synchronous>, transform_indices = @transform_1, window_bounds = array<i64: 16, 128>}, {pipeline_mode = #tpu.pipeline_mode<synchronous>, transform_indices = @transform_2, window_bounds = array<i64: 1, 128>}, {pipeline_mode = #tpu.pipeline_mode<synchronous>, transform_indices = @transform_3, window_bounds = array<i64: 128, 2>}, {pipeline_mode = #tpu.pipeline_mode<synchronous>, transform_indices = @transform_4, window_bounds = array<i64: 1, 2>}, {transform_indices = @transform_5, window_bounds = array<i64: 8, 128>}, {transform_indices = @transform_6, window_bounds = array<i64: 8, 2>}]} {
    %c0 = arith.constant 0 : index
    %c0_0 = arith.constant 0 : index
    %0 = vector.load %arg1[%c0, %c0_0] : memref<8x16xf32, #tpu.memory_space<vmem>>, vector<8x16xf32>
    %c0_1 = arith.constant 0 : index
    %c0_2 = arith.constant 0 : index
    %1 = vector.load %arg2[%c0_1, %c0_2] : memref<16x128xf32, #tpu.memory_space<vmem>>, vector<16x128xf32>
    %cst = arith.constant dense<0.000000e+00> : vector<8x128xf32>
    %2 = tpu.matmul %0, %1, %cst {dimension_numbers = #tpu.dot_dimension_numbers<[1], [0], [0], [1], [0, 0, 1, 1], [], []>} : vector<8x16xf32>, vector<16x128xf32>, vector<8x128xf32> -> vector<8x128xf32>
    %c0_3 = arith.constant 0 : index
    %c0_4 = arith.constant 0 : index
    %3 = vector.load %arg3[%c0_3, %c0_4] : memref<1x128xf32, #tpu.memory_space<vmem>>, vector<1x128xf32>
    %4 = vector.broadcast %3 : vector<1x128xf32> to vector<8x128xf32>
    %5 = arith.addf %2, %4 : vector<8x128xf32>
    %c0_5 = arith.constant 0 : index
    %c0_6 = arith.constant 0 : index
    %6 = vector.load %arg6[%c0_5, %c0_6] : memref<8x128xf32, #tpu.memory_space<vmem>>, vector<8x128xf32>
    tpu.vector_store %arg6[%c0_5, %c0_6], %5 {strides = array<i32>} : memref<8x128xf32, #tpu.memory_space<vmem>>, vector<8x128xf32>,
    %c0_7 = arith.constant 0 : index
    %c0_8 = arith.constant 0 : index
    %7 = vector.load %arg4[%c0_7, %c0_8] : memref<128x2xf32, #tpu.memory_space<vmem>>, vector<128x2xf32>
    %cst_9 = arith.constant dense<0.000000e+00> : vector<8x2xf32>
    %8 = tpu.matmul %5, %7, %cst_9 {dimension_numbers = #tpu.dot_dimension_numbers<[1], [0], [0], [1], [0, 0, 1, 1], [], []>} : vector<8x128xf32>, vector<128x2xf32>, vector<8x2xf32> -> vector<8x2xf32>
    %c0_10 = arith.constant 0 : index
    %c0_11 = arith.constant 0 : index
    %9 = vector.load %arg5[%c0_10, %c0_11] : memref<1x2xf32, #tpu.memory_space<vmem>>, vector<1x2xf32>
    %10 = vector.broadcast %9 : vector<1x2xf32> to vector<8x2xf32>
    %11 = arith.addf %8, %10 : vector<8x2xf32>
    %c0_12 = arith.constant 0 : index
    %c0_13 = arith.constant 0 : index
    %12 = vector.load %arg7[%c0_12, %c0_13] : memref<8x2xf32, #tpu.memory_space<vmem>>, vector<8x2xf32>
    tpu.vector_store %arg7[%c0_12, %c0_13], %11 {strides = array<i32>} : memref<8x2xf32, #tpu.memory_space<vmem>>, vector<8x2xf32>,
    return
  }
  func.func @transform_0(%arg0: i32) -> (i32, i32) {
    %c0_i32 = arith.constant 0 : i32
    %c0_i32_0 = arith.constant 0 : i32
    return %arg0, %c0_i32 : i32, i32
  }
  func.func @transform_1(%arg0: i32) -> (i32, i32) {
    %c0_i32 = arith.constant 0 : i32
    %c0_i32_0 = arith.constant 0 : i32
    %c0_i32_1 = arith.constant 0 : i32
    return %c0_i32, %c0_i32_0 : i32, i32
  }
  func.func @transform_2(%arg0: i32) -> (i32, i32) {
    %c0_i32 = arith.constant 0 : i32
    %c0_i32_0 = arith.constant 0 : i32
    %c0_i32_1 = arith.constant 0 : i32
    return %c0_i32, %c0_i32_0 : i32, i32
  }
  func.func @transform_3(%arg0: i32) -> (i32, i32) {
    %c0_i32 = arith.constant 0 : i32
    %c0_i32_0 = arith.constant 0 : i32
    %c0_i32_1 = arith.constant 0 : i32
    return %c0_i32, %c0_i32_0 : i32, i32
  }
  func.func @transform_4(%arg0: i32) -> (i32, i32) {
    %c0_i32 = arith.constant 0 : i32
    %c0_i32_0 = arith.constant 0 : i32
    %c0_i32_1 = arith.constant 0 : i32
    return %c0_i32, %c0_i32_0 : i32, i32
  }
  func.func @transform_5(%arg0: i32) -> (i32, i32) {
    %c0_i32 = arith.constant 0 : i32
    %c0_i32_0 = arith.constant 0 : i32
    return %arg0, %c0_i32 : i32, i32
  }
  func.func @transform_6(%arg0: i32) -> (i32, i32) {
    %c0_i32 = arith.constant 0 : i32
    %c0_i32_0 = arith.constant 0 : i32
    return %arg0, %c0_i32 : i32, i32
  }
}

module attributes {stable_mosaic.version = 11 : i64} {
  func.func @attention_kernel(%arg0: i32, %arg1: i32, %arg2: memref<1x1xi32, #tpu.memory_space<smem>>, %arg3: memref<8x1xf32, #tpu.memory_space<vmem>>, %arg4: memref<1x128xf32, #tpu.memory_space<vmem>>, %arg5: memref<128x128xf32, #tpu.memory_space<vmem>>, %arg6: memref<8x128xi8, #tpu.memory_space<vmem>>, %arg7: memref<8x128xf32, #tpu.memory_space<vmem>>, %arg8: memref<8x1xf32, #tpu.memory_space<vmem>>, %arg9: memref<8x1xf32, #tpu.memory_space<vmem>>, %arg10: memref<8x128xf32, #tpu.memory_space<vmem>>) attributes {dimension_semantics = [#tpu.dimension_semantics<parallel>, #tpu.dimension_semantics<arbitrary>], iteration_bounds = array<i64: 1, 1>, scalar_prefetch = 1 : i64, scratch_operands = 3 : i64, tpu.core_type = #tpu.core_type<tc>, window_params = [{transform_indices = @transform_0, window_bounds = array<i64: 8, 1>}, {transform_indices = @transform_1, window_bounds = array<i64: 1, 128>}, {transform_indices = @transform_2, window_bounds = array<i64: 128, 128>}, {transform_indices = @transform_3, window_bounds = array<i64: 8, 128>}, {transform_indices = @transform_4, window_bounds = array<i64: 8, 128>}]} {
    %c0_i32 = arith.constant 0 : i32
    %0 = arith.cmpi eq, %arg1, %c0_i32 : i32
    %1 = arith.extui %0 : i1 to i32
    %c0_i32_0 = arith.constant 0 : i32
    %2 = arith.cmpi ne, %1, %c0_i32_0 : i32
    scf.if %2 {
      %cst = arith.constant -1.000000e+30 : f32
      %12 = vector.broadcast %cst : f32 to vector<8x1xf32>
      %c0 = arith.constant 0 : index
      %c0_5 = arith.constant 0 : index
      %13 = vector.load %arg8[%c0, %c0_5] : memref<8x1xf32, #tpu.memory_space<vmem>>, vector<8x1xf32>
      tpu.vector_store %arg8[%c0, %c0_5], %12 {strides = array<i32>} : memref<8x1xf32, #tpu.memory_space<vmem>>, vector<8x1xf32>,
      %cst_6 = arith.constant 0.000000e+00 : f32
      %14 = vector.broadcast %cst_6 : f32 to vector<8x1xf32>
      %c0_7 = arith.constant 0 : index
      %c0_8 = arith.constant 0 : index
      %15 = vector.load %arg9[%c0_7, %c0_8] : memref<8x1xf32, #tpu.memory_space<vmem>>, vector<8x1xf32>
      tpu.vector_store %arg9[%c0_7, %c0_8], %14 {strides = array<i32>} : memref<8x1xf32, #tpu.memory_space<vmem>>, vector<8x1xf32>,
      %cst_9 = arith.constant 0.000000e+00 : f32
      %16 = vector.broadcast %cst_9 : f32 to vector<8x128xf32>
      %c0_10 = arith.constant 0 : index
      %c0_11 = arith.constant 0 : index
      %17 = vector.load %arg10[%c0_10, %c0_11] : memref<8x128xf32, #tpu.memory_space<vmem>>, vector<8x128xf32>
      tpu.vector_store %arg10[%c0_10, %c0_11], %16 {strides = array<i32>} : memref<8x128xf32, #tpu.memory_space<vmem>>, vector<8x128xf32>,
    } else {
    }
    %3 = arith.index_cast %arg0 : i32 to index
    %4 = arith.index_cast %arg1 : i32 to index
    %5 = memref.load %arg2[%3, %4] : memref<1x1xi32, #tpu.memory_space<smem>>
    %c0_i32_1 = arith.constant 0 : i32
    %6 = arith.cmpi ne, %5, %c0_i32_1 : i32
    %7 = arith.extui %6 : i1 to i32
    %c0_i32_2 = arith.constant 0 : i32
    %8 = arith.cmpi ne, %7, %c0_i32_2 : i32
    scf.if %8 {
      %c0 = arith.constant 0 : index
      %c0_5 = arith.constant 0 : index
      %12 = vector.load %arg6[%c0, %c0_5] : memref<8x128xi8, #tpu.memory_space<vmem>>, vector<8x128xi8>
      %13 = arith.sitofp %12 : vector<8x128xi8> to vector<8x128xf32>
      %c0_6 = arith.constant 0 : index
      %c0_7 = arith.constant 0 : index
      %14 = vector.load %arg3[%c0_6, %c0_7] : memref<8x1xf32, #tpu.memory_space<vmem>>, vector<8x1xf32>
      %c0_8 = arith.constant 0 : index
      %c0_9 = arith.constant 0 : index
      %15 = vector.load %arg4[%c0_8, %c0_9] : memref<1x128xf32, #tpu.memory_space<vmem>>, vector<1x128xf32>
      %16 = vector.broadcast %14 : vector<8x1xf32> to vector<8x128xf32>
      %17 = vector.broadcast %15 : vector<1x128xf32> to vector<8x128xf32>
      %18 = arith.addf %16, %17 : vector<8x128xf32>
      %cst = arith.constant 2.000000e-01 : f32
      %19 = vector.broadcast %cst : f32 to vector<8x128xf32>
      %20 = arith.mulf %19, %18 : vector<8x128xf32>
      %21 = arith.maximumf %18, %20 : vector<8x128xf32>
      %cst_10 = arith.constant 1.000000e+00 : f32
      %22 = vector.broadcast %cst_10 : f32 to vector<8x128xf32>
      %23 = arith.subf %13, %22 : vector<8x128xf32>
      %cst_11 = arith.constant 1.000000e+30 : f32
      %24 = vector.broadcast %cst_11 : f32 to vector<8x128xf32>
      %25 = arith.mulf %23, %24 : vector<8x128xf32>
      %26 = arith.addf %21, %25 : vector<8x128xf32>
      %c0_12 = arith.constant 0 : index
      %c0_13 = arith.constant 0 : index
      %27 = vector.load %arg8[%c0_12, %c0_13] : memref<8x1xf32, #tpu.memory_space<vmem>>, vector<8x1xf32>
      %cst_14 = arith.constant dense<0xFF800000> : vector<8xf32>
      %28 = vector.multi_reduction <maximumf>, %26, %cst_14 [1] : vector<8x128xf32> to vector<8xf32>
      %29 = vector.shape_cast %28 : vector<8xf32> to vector<8x1xf32>
      %30 = arith.maximumf %27, %29 : vector<8x1xf32>
      %31 = arith.subf %27, %30 : vector<8x1xf32>
      %32 = math.exp %31 : vector<8x1xf32>
      %33 = vector.broadcast %30 : vector<8x1xf32> to vector<8x128xf32>
      %34 = arith.subf %26, %33 : vector<8x128xf32>
      %35 = math.exp %34 : vector<8x128xf32>
      %36 = arith.mulf %35, %13 : vector<8x128xf32>
      %c0_15 = arith.constant 0 : index
      %c0_16 = arith.constant 0 : index
      %37 = vector.load %arg9[%c0_15, %c0_16] : memref<8x1xf32, #tpu.memory_space<vmem>>, vector<8x1xf32>
      %38 = arith.mulf %32, %37 : vector<8x1xf32>
      %cst_17 = arith.constant dense<0.000000e+00> : vector<8xf32>
      %39 = vector.multi_reduction <add>, %36, %cst_17 [1] : vector<8x128xf32> to vector<8xf32>
      %40 = vector.shape_cast %39 : vector<8xf32> to vector<8x1xf32>
      %41 = arith.addf %38, %40 : vector<8x1xf32>
      %c0_18 = arith.constant 0 : index
      %c0_19 = arith.constant 0 : index
      %42 = vector.load %arg9[%c0_18, %c0_19] : memref<8x1xf32, #tpu.memory_space<vmem>>, vector<8x1xf32>
      tpu.vector_store %arg9[%c0_18, %c0_19], %41 {strides = array<i32>} : memref<8x1xf32, #tpu.memory_space<vmem>>, vector<8x1xf32>,
      %c0_20 = arith.constant 0 : index
      %c0_21 = arith.constant 0 : index
      %43 = vector.load %arg10[%c0_20, %c0_21] : memref<8x128xf32, #tpu.memory_space<vmem>>, vector<8x128xf32>
      %44 = vector.broadcast %32 : vector<8x1xf32> to vector<8x128xf32>
      %45 = arith.mulf %44, %43 : vector<8x128xf32>
      %c0_22 = arith.constant 0 : index
      %c0_23 = arith.constant 0 : index
      %46 = vector.load %arg5[%c0_22, %c0_23] : memref<128x128xf32, #tpu.memory_space<vmem>>, vector<128x128xf32>
      %cst_24 = arith.constant dense<0.000000e+00> : vector<8x128xf32>
      %47 = tpu.matmul %36, %46, %cst_24 {dimension_numbers = #tpu.dot_dimension_numbers<[1], [0], [0], [1], [0, 0, 1, 1], [], []>} : vector<8x128xf32>, vector<128x128xf32>, vector<8x128xf32> -> vector<8x128xf32>
      %48 = arith.addf %45, %47 : vector<8x128xf32>
      %c0_25 = arith.constant 0 : index
      %c0_26 = arith.constant 0 : index
      %49 = vector.load %arg10[%c0_25, %c0_26] : memref<8x128xf32, #tpu.memory_space<vmem>>, vector<8x128xf32>
      tpu.vector_store %arg10[%c0_25, %c0_26], %48 {strides = array<i32>} : memref<8x128xf32, #tpu.memory_space<vmem>>, vector<8x128xf32>,
      %c0_27 = arith.constant 0 : index
      %c0_28 = arith.constant 0 : index
      %50 = vector.load %arg8[%c0_27, %c0_28] : memref<8x1xf32, #tpu.memory_space<vmem>>, vector<8x1xf32>
      tpu.vector_store %arg8[%c0_27, %c0_28], %30 {strides = array<i32>} : memref<8x1xf32, #tpu.memory_space<vmem>>, vector<8x1xf32>,
    } else {
    }
    %c0_i32_3 = arith.constant 0 : i32
    %9 = arith.cmpi eq, %arg1, %c0_i32_3 : i32
    %10 = arith.extui %9 : i1 to i32
    %c0_i32_4 = arith.constant 0 : i32
    %11 = arith.cmpi ne, %10, %c0_i32_4 : i32
    scf.if %11 {
      %c0 = arith.constant 0 : index
      %c0_5 = arith.constant 0 : index
      %12 = vector.load %arg9[%c0, %c0_5] : memref<8x1xf32, #tpu.memory_space<vmem>>, vector<8x1xf32>
      %cst = arith.constant 0.000000e+00 : f32
      %13 = vector.broadcast %cst : f32 to vector<8x1xf32>
      %14 = arith.cmpf ogt, %12, %13 : vector<8x1xf32>
      %cst_6 = arith.constant 1.000000e+00 : f32
      %15 = vector.broadcast %cst_6 : f32 to vector<8x1xf32>
      %16 = arith.select %14, %12, %15 : vector<8x1xi1>, vector<8x1xf32>
      %17 = tpu.reciprocal %16 {approx = true} : vector<8x1xf32> -> vector<8x1xf32>
      %18 = arith.mulf %16, %17 : vector<8x1xf32>
      %cst_7 = arith.constant 2.000000e+00 : f32
      %19 = vector.broadcast %cst_7 : f32 to vector<8x1xf32>
      %20 = arith.subf %19, %18 : vector<8x1xf32>
      %21 = arith.mulf %17, %20 : vector<8x1xf32>
      %c0_8 = arith.constant 0 : index
      %c0_9 = arith.constant 0 : index
      %22 = vector.load %arg10[%c0_8, %c0_9] : memref<8x128xf32, #tpu.memory_space<vmem>>, vector<8x128xf32>
      %23 = vector.broadcast %21 : vector<8x1xf32> to vector<8x128xf32>
      %24 = arith.mulf %22, %23 : vector<8x128xf32>
      %c0_10 = arith.constant 0 : index
      %c0_11 = arith.constant 0 : index
      %25 = vector.load %arg7[%c0_10, %c0_11] : memref<8x128xf32, #tpu.memory_space<vmem>>, vector<8x128xf32>
      tpu.vector_store %arg7[%c0_10, %c0_11], %24 {strides = array<i32>} : memref<8x128xf32, #tpu.memory_space<vmem>>, vector<8x128xf32>,
    } else {
    }
    return
  }
  func.func @transform_0(%arg0: i32, %arg1: i32, %arg2: memref<1x1xi32, #tpu.memory_space<smem>>) -> (i32, i32) {
    %c0_i32 = arith.constant 0 : i32
    %c0_i32_0 = arith.constant 0 : i32
    return %arg0, %c0_i32 : i32, i32
  }
  func.func @transform_1(%arg0: i32, %arg1: i32, %arg2: memref<1x1xi32, #tpu.memory_space<smem>>) -> (i32, i32) {
    %c0_i32 = arith.constant 0 : i32
    %c0_i32_0 = arith.constant 0 : i32
    return %c0_i32, %arg1 : i32, i32
  }
  func.func @transform_2(%arg0: i32, %arg1: i32, %arg2: memref<1x1xi32, #tpu.memory_space<smem>>) -> (i32, i32) {
    %c0_i32 = arith.constant 0 : i32
    %c0_i32_0 = arith.constant 0 : i32
    return %arg1, %c0_i32 : i32, i32
  }
  func.func @transform_3(%arg0: i32, %arg1: i32, %arg2: memref<1x1xi32, #tpu.memory_space<smem>>) -> (i32, i32) {
    %c0_i32 = arith.constant 0 : i32
    return %arg0, %arg1 : i32, i32
  }
  func.func @transform_4(%arg0: i32, %arg1: i32, %arg2: memref<1x1xi32, #tpu.memory_space<smem>>) -> (i32, i32) {
    %c0_i32 = arith.constant 0 : i32
    %c0_i32_0 = arith.constant 0 : i32
    return %arg0, %c0_i32 : i32, i32
  }
}

</mosaic_0001>

<bundles_post_ra>
// kernel: global_attention_layer.3
= control target key start
LH: loop header
LB: loop body
LE: loop exit
PB: predicated region body
PF: predicated region fallthrough
CT: control target
= control target key end

     0   :  { %11 = vsyncpa [#allocation8], 0  ;;  %vm24_vm0 = vcmask 7168   ;;  %v329_v0 = vmov -1e+30   ;;  %v330_v1 = vmov 0.0   ;;  %s447_s0 = inlined_call_operand.<no memory space> [shape: s32[1,1], index: 0, kind: input, shape index: {}]   ;;  %s448_s1 = inlined_call_operand.vmem [shape: f32[8,1], index: 1, kind: input, shape index: {}]   ;;  %s449_s2 = inlined_call_operand.vmem [shape: f32[1,128], index: 2, kind: input, shape index: {}]   ;;  %s450_s3 = inlined_call_operand.vmem [shape: f32[128,128], index: 3, kind: input, shape index: {}]   ;;  %s451_s4 = inlined_call_operand.vmem [shape: s8[8,128], index: 4, kind: input, shape index: {}]   ;;  %s452_s5 = inlined_call_operand.hbm [shape: f32[8,128], index: 5, kind: output, shape index: {}]  }
   0x1   :  { %25 = vst.msk [vmem:[#allocation2] sm:$0xff] %vm24_vm0, %v329_v0  ;;  %26 = vst.msk [vmem:[#allocation3] sm:$0xff] %vm24_vm0, %v330_v1  ;;  %p209_p0 = scmp.eq.s32.totalorder %s447_s0, 0 }
   0x2   :  { %27 = vst [vmem:[#allocation4] sm:$0xff] %v330_v1  ;;  %v39_v2 = vld [vmem:[%s448_s1] sm:$0xff] (!%p209_p0)  ;;  %v331_v3 = vmov (!%p209_p0), 0   ;;  %v89_v16 = vld [vmem:[%s450_s3 + $0x8] sm:$0xff] (!%p209_p0)  ;;  %v90_v17 = vld [vmem:[%s450_s3 + $0x10] sm:$0xff] (!%p209_p0)  ;;  %v332_v18 = vmov (!%p209_p0), 0.0|0.0  }
   0x3   :  { %35 = sbr.rel (%p209_p0) target bundleno = 644 (0x284), region = 25  ;;  %296 = vset.pattern.permute.xlu0 (!%p209_p0), %v331_v3  ;;  %297 = vset.pattern.permute.xlu1 (!%p209_p0), %v331_v3  ;;  %v36_v4 = vld [vmem:[%s451_s4] sm:$0x3] (!%p209_p0)  ;;  %v91_v20 = vld [vmem:[%s450_s3 + $0x18] sm:$0xff] (!%p209_p0)  ;;  %v93_v23 = vld [vmem:[%s450_s3 + $0x28] sm:$0xff] (!%p209_p0)  ;;  %vm333_vm1 = vmmov (!%p209_p0), 0  }
   0x4   :  { %43 = vperm.xlu0 (!%p209_p0), %296, %v39_v2   ;;  %v37_v5 = vunpack.c.0.s8 (!%p209_p0), %v36_v4  ;;  %v210_v7 = vld [vmem:[%s449_s2] ss:$0 sm:$0xff] (!%p209_p0)  ;;  %264 = vmatprep.subr.bf16.mxu0 (!%p209_p0), %v332_v18  ;;  %v268_v21 = vpack.c.bf16 (!%p209_p0), %v91_v20, %v90_v17  ;;  %v94_v25 = vld [vmem:[%s450_s3 + $0x30] sm:$0xff] (!%p209_p0)  ;;  %v95_v26 = vld [vmem:[%s450_s3 + $0x38] sm:$0xff] (!%p209_p0)  ;;  %v334_v46 = vmov (!%p209_p0), 0.0  }
   0x5   :  { %v88_v15 = vld [vmem:[%s450_s3] sm:$0xff] (!%p209_p0)  ;;  %v274_v27 = vpack.c.bf16 (!%p209_p0), %v95_v26, %v94_v25  ;;  %v97_v32 = vld [vmem:[%s450_s3 + $0x48] sm:$0xff] (!%p209_p0)  ;;  %v98_v36 = vld [vmem:[%s450_s3 + $0x50] sm:$0xff] (!%p209_p0)  ;;  %261 = vmatprep.mubr.msk.f32.mxu0 (!%p209_p0), %vm333_vm1, %v334_v46 }
   0x6   :  { %v378_v6 = vcvt.s32.f32 (!%p209_p0), %v37_v5  ;;  %v265_v19 = vpack.c.bf16 (!%p209_p0), %v89_v16, %v88_v15  ;;  %v92_v22 = vld [vmem:[%s450_s3 + $0x20] sm:$0xff] (!%p209_p0)  ;;  %v99_v37 = vld [vmem:[%s450_s3 + $0x58] sm:$0xff] (!%p209_p0)  ;;  %v101_v40 = vld [vmem:[%s450_s3 + $0x68] sm:$0xff] (!%p209_p0) }
   0x7   :  { %v271_v24 = vpack.c.bf16 (!%p209_p0), %v93_v23, %v92_v22  ;;  %v96_v31 = vld [vmem:[%s450_s3 + $0x40] sm:$0xff] (!%p209_p0)  ;;  %v280_v38 = vpack.c.bf16 (!%p209_p0), %v99_v37, %v98_v36  ;;  %v102_v42 = vld [vmem:[%s450_s3 + $0x70] sm:$0xff] (!%p209_p0)  ;;  %v103_v43 = vld [vmem:[%s450_s3 + $0x78] sm:$0xff] (!%p209_p0) }
   0x8   :  { %v211_v8 = vadd.f32 (!%p209_p0), -1.0, %v378_v6  ;;  %266 = vmatpush3.bf16.msra.mxu0 (!%p209_p0), %v265_v19  ;;  %v58_v28 = vld [vmem:[#allocation2] sm:$0xff] (!%p209_p0)  ;;  %v277_v34 = vpack.c.bf16 (!%p209_p0), %v97_v32, %v96_v31  ;;  %v286_v44 = vpack.c.bf16 (!%p209_p0), %v103_v43, %v102_v42  ;;  %v74_v52 = vld [vmem:[#allocation3] sm:$0xff] (!%p209_p0) }
   0x9   :  { %267 = vmatprep.subr.bf16.mxu0 (!%p209_p0), %v332_v18  ;;  %v100_v39 = vld [vmem:[%s450_s3 + $0x60] sm:$0xff] (!%p209_p0)  ;;  %v81_v56 = vld [vmem:[#allocation4] sm:$0xff] (!%p209_p0) }
   0xa   :  { %v56_v12 = vmul.f32 1e+30, %v211_v8  ;;  %v283_v41 = vpack.c.bf16 %v101_v40, %v100_v39 }
   0xc   :  { %269 = vmatpush3.bf16.msra.mxu0 %v268_v21 }
   0xd   :  { %270 = vmatprep.subr.bf16.mxu0 %v332_v18 }
  0x10   :  { %272 = vmatpush3.bf16.msra.mxu0 %v271_v24 }
  0x11   :  { %273 = vmatprep.subr.bf16.mxu0 %v332_v18 }
  0x14   :  { %275 = vmatpush3.bf16.msra.mxu0 %v274_v27 }
  0x15   :  { %276 = vmatprep.subr.bf16.mxu0 %v332_v18 }
  0x18   :  { %278 = vmatpush3.bf16.msra.mxu0 %v277_v34 }
  0x19   :  { %279 = vmatprep.subr.bf16.mxu0 %v332_v18 }
  0x1c   :  { %281 = vmatpush3.bf16.msra.mxu0 %v280_v38 }
  0x1d   :  { %282 = vmatprep.subr.bf16.mxu0 %v332_v18 }
  0x20   :  { %284 = vmatpush3.bf16.msra.mxu0 %v283_v41 }
  0x21   :  { %285 = vmatprep.subr.bf16.mxu0 %v332_v18 }
  0x24   :  { %287 = vmatpush3.bf16.msra.mxu0 %v286_v44 }
  0x83   :  { %v44_v9 = vpop.permute.xlu0 %43 }
  0x84   :  { %v52_v10 = vadd.f32 %v210_v7, %v44_v9 }
  0x86   :  { %v53_v11 = vmul.f32 0.2, %v52_v10 }
  0x88   :  { %v54_v13 = vmax.f32 %v52_v10, %v53_v11 }
  0x8a   :  { %v57_v14 = vadd.f32 %v56_v12, %v54_v13 }
  0x8c   :  { %59 = vmax.xlane.f32.xlu0 %v57_v14 }
 0x119   :  { %v60_v29 = vpop.xlane.xlu0 %59 }
 0x11a   :  { %v61_v30 = vmax.f32 %v58_v28, %v60_v29 }
 0x11c   :  { %v62_v33 = vsub.f32 %v58_v28, %v61_v30  ;;  %176 = vst.msk [vmem:[#allocation2] sm:$0xff] %vm24_vm0, %v61_v30  ;;  %67 = vperm.xlu1 %297, %v61_v30  }
 0x11e   :  { %v63_v35 = vmul.f32 1.442695, %v62_v33 }
 0x120   :  { %298 = vpow2.f32 %v63_v35 }
 0x12a   :  { %v299_v45 = vpop.eup %298 }
 0x12b   :  { %84 = vperm.xlu0 %296, %v299_v45   ;;  %v75_v53 = vmul.f32 %v299_v45, %v74_v52 }
 0x19b   :  { %v68_v47 = vpop.permute.xlu1 %67 }
 0x19c   :  { %v70_v48 = vsub.f32 %v57_v14, %v68_v47 }
 0x19e   :  { %v71_v49 = vmul.f32 1.442695, %v70_v48 }
 0x1a0   :  { %300 = vpow2.f32 %v71_v49 }
 0x1aa   :  { %v301_v50 = vpop.eup %300  ;;  %v85_v57 = vpop.permute.xlu0 %84 }
 0x1ab   :  { %v73_v51 = vmul.f32 %v301_v50, %v378_v6  ;;  %v87_v58 = vmul.f32 %v85_v57, %v81_v56 }
 0x1ad   :  { %76 = vadd.xlane.f32.xlu1 %v73_v51  ;;  %262 = vmatmul.mubr.f32.vlgmr.msra.gmra.mrb[0].mxu0 %v73_v51 }
 0x23a   :  { %v77_v54 = vpop.xlane.xlu1 %76 }
 0x23b   :  { %v78_v55 = vadd.f32 %v77_v54, %v75_v53 }
 0x23d   :  { %80 = vst.msk [vmem:[#allocation3] sm:$0xff] %vm24_vm0, %v78_v55 }
 0x280   :  { %v170_v59 = vpop.f32.mrb[0].mxu0 }
 0x281   :  { %v174_v60 = vadd.f32 %v170_v59, %v87_v58  ;;  %v263_v61 = vpop.f32.mrb[1].mxu0 }
 0x283   :  { %175 = vst [vmem:[#allocation4] sm:$0xff] %v174_v60 }
 0x284 PF:  { %v180_v62 = vld [vmem:[#allocation3] sm:$0xff]  ;;  %v335_v63 = vmov 0   ;;  %s336_s3 = smov [#allocation7]  }
 0x285   :  { %302 = vset.pattern.permute.xlu0 %v335_v63  ;;  %vm181_vm2 = vcmp.gt.f32.partialorder %v180_v62, 0.0  ;;  %s201_s26 = sshll.u32 %s336_s3, 4  ;;  %s202_s26 = int_to_ptr.vmem [resolvable:$true] %s201_s26 }
 0x286   :  { %v182_v0 = vsel %vm181_vm2, %v180_v62, 1.0  ;;  %s305_s27 = scalar_lea.vmem %s202_s26, 128  ;;  %p310_p2 = scmp.lt.s32.totalorder %s202_s26, %s202_s26 }
 0x287   :  { %303 = vrcp.f32 %v182_v0  ;;  %p306_p1 = scmp.ne.s32.totalorder %s202_s26, %s305_s27  ;;  %p311_p3 = scmp.lt.s32.totalorder %s305_s27, %s305_s27 }
 0x289   :  { %p312_p4 = por %p311_p3, %p310_p2 }
 0x28a   :  { %v187_v5 = vld [vmem:[#allocation4] sm:$0xff] }
 0x28b   :  { %p313_p5 = pnand %p312_p4, %p306_p1 }
 0x291   :  { %v304_v1 = vpop.eup %303 }
 0x292   :  { %v184_v2 = vmul.f32 %v304_v1, %v182_v0 }
 0x294   :  { %v185_v3 = vsub.f32 2.0, %v184_v2 }
 0x296   :  { %v186_v4 = vmul.f32 %v304_v1, %v185_v3 }
 0x298   :  { %190 = vperm.xlu0 %302, %v186_v4  }
 0x317   :  { %v191_v6 = vpop.permute.xlu0 %190 }
 0x318   :  { %v193_v7 = vmul.f32 %v191_v6, %v187_v5 }
 0x31a   :  { %194 = vst [vmem:[#allocation7] sm:$0xff] %v193_v7 }
 0x31b   :  { %316 = shalt.err (!%p313_p5)
}
 0x31c   :  { %s317_s29 = scalar_lea.hbm %s452_s5, 128 }
 0x31d   :  { %p318_p6 = scmp.ne.s32.totalorder %s452_s5, %s317_s29  ;;  %p321_p7 = scmp.lt.u32.totalorder %s317_s29, %s452_s5 }
 0x31f   :  { %p323_p8 = pnand %p321_p7, %p318_p6 }
 0x321   :  { %326 = shalt.err (!%p323_p8)
}
 0x322   :  { %204 = dma.vmem_to_hbm [thread:$0]  %s202_s26, 128, %s452_s5, [#allocation8]  }
 0x323   :  { %327 = dma.done.wait [#allocation8], 128  }
 0x324   :  { %328 = vsyncadd [#allocation8], 4294967168 }
 0x325   :  { %208 = vsyncpa [#allocation8], 1 }

// kernel: global_attention_layer.2
= control target key start
LH: loop header
LB: loop body
LE: loop exit
PB: predicated region body
PF: predicated region fallthrough
CT: control target
= control target key end

     0   :  { %s681_s21 = smov 0   ;;  %s766_s0 = inlined_call_operand.vmem [shape: f32[128,16], index: 0, kind: input, shape index: {}]   ;;  %s767_s1 = inlined_call_operand.vmem [shape: f32[16,128], index: 1, kind: input, shape index: {}]   ;;  %s768_s2 = inlined_call_operand.vmem [shape: f32[1,128], index: 2, kind: input, shape index: {}]   ;;  %s769_s3 = inlined_call_operand.vmem [shape: f32[128,2], index: 3, kind: input, shape index: {}]   ;;  %s770_s4 = inlined_call_operand.vmem [shape: f32[1,2], index: 4, kind: input, shape index: {}]   ;;  %s771_s5 = inlined_call_operand.vmem [shape: f32[128,128], index: 5, kind: output, shape index: {0}]   ;;  %s772_s6 = inlined_call_operand.vmem [shape: f32[128,2], index: 6, kind: output, shape index: {1}]  }
   0x1 LB: > { %s522_s22 = sadd.s32 4294967295, %s641_s21   ;;  %p526_p0 = scmp.ge.s32.totalorder %s641_s21, 1  ;;  %s641_s21 = sphi %s681_s21, %s17_s21  }
   0x2   : > { %p214_p1 = scmp.lt.s32.totalorder %s641_s21, 17 }
   0x4   : > { %p215_p2 = pnand %p526_p0, %p214_p1 }
   0x5   : > { %v259_v0 = vld [vmem:[%s767_s1] sm:$0xff] (!%p215_p2)  ;;  %v260_v1 = vld [vmem:[%s767_s1 + $0x8] sm:$0xff] (!%p215_p2)  ;;  %p246_p3 = scmp.lt.s32.totalorder (!%p215_p2), %s522_s22, 15  ;;  %v643_v2 = vmov (!%p215_p2), 0.0|0.0   ;;  %vm644_vm0 = vmmov (!%p215_p2), 0   ;;  %v645_v4 = vmov (!%p215_p2), 0.0  }
   0x6   : > { %218 = sbr.rel (%p215_p2) target bundleno = 446 (0x1be), region = 40  ;;  %597 = vmatprep.subr.bf16.mxu0 (!%p215_p2), %v643_v2  ;;  %v598_v3 = vpack.c.bf16 (!%p215_p2), %v260_v1, %v259_v0  ;;  %559 = vmatprep.mubr.msk.f32.mxu0 (!%p215_p2), %vm644_vm0, %v645_v4  ;;  %v343_v5 = vld [vmem:[%s769_s3] sm:$0xff] (!%p215_p2)  ;;  %v344_v6 = vld [vmem:[%s769_s3 + $0x8] sm:$0xff] (!%p215_p2)  ;;  %v345_v7 = vld [vmem:[%s769_s3 + $0x10] sm:$0xff] (!%p215_p2)  ;;  %vm268_vm1 = vcmask (!%p215_p2), 130048   ;;  %vm436_vm2 = vcmask (!%p215_p2), 15360  }
   0x7   : > { %600 = vmatprep.subr.bf16.mxu1 (!%p215_p2), %v643_v2  ;;  %v601_v8 = vpack.c.bf16 (!%p215_p2), %v344_v6, %v343_v5  ;;  %v346_v9 = vld [vmem:[%s769_s3 + $0x18] sm:$0xff] (!%p215_p2)  ;;  %594 = vmatprep.mubr.msk.f32.mxu1 (!%p215_p2), %vm644_vm0, %v645_v4  ;;  %v347_v11 = vld [vmem:[%s769_s3 + $0x20] sm:$0xff] (!%p215_p2)  ;;  %v348_v12 = vld [vmem:[%s769_s3 + $0x28] sm:$0xff] (!%p215_p2) }
   0x8   : > { %599 = vmatpush3.bf16.msra.mxu0 (!%p215_p2), %v598_v3  ;;  %v604_v10 = vpack.c.bf16 (!%p215_p2), %v346_v9, %v345_v7  ;;  %v607_v14 = vpack.c.bf16 (!%p215_p2), %v348_v12, %v347_v11  ;;  %v349_v15 = vld [vmem:[%s769_s3 + $0x30] sm:$0xff] (!%p215_p2)  ;;  %v350_v16 = vld [vmem:[%s769_s3 + $0x38] sm:$0xff] (!%p215_p2)  ;;  %v351_v18 = vld [vmem:[%s769_s3 + $0x40] sm:$0xff] (!%p215_p2) }
   0x9   : > { %602 = vmatpush3.bf16.msra.mxu1 (!%p215_p2), %v601_v8  ;;  %v610_v17 = vpack.c.bf16 (!%p215_p2), %v350_v16, %v349_v15  ;;  %v352_v19 = vld [vmem:[%s769_s3 + $0x48] sm:$0xff] (!%p215_p2)  ;;  %v353_v21 = vld [vmem:[%s769_s3 + $0x50] sm:$0xff] (!%p215_p2)  ;;  %v354_v22 = vld [vmem:[%s769_s3 + $0x58] sm:$0xff] (!%p215_p2) }
   0xa   : > { %603 = vmatprep.subr.bf16.mxu1 (!%p215_p2), %v643_v2  ;;  %v613_v20 = vpack.c.bf16 (!%p215_p2), %v352_v19, %v351_v18  ;;  %v616_v23 = vpack.c.bf16 (!%p215_p2), %v354_v22, %v353_v21  ;;  %v355_v24 = vld [vmem:[%s769_s3 + $0x60] sm:$0xff] (!%p215_p2)  ;;  %v356_v25 = vld [vmem:[%s769_s3 + $0x68] sm:$0xff] (!%p215_p2)  ;;  %v357_v27 = vld [vmem:[%s769_s3 + $0x70] sm:$0xff] (!%p215_p2) }
   0xb   : > { %v619_v26 = vpack.c.bf16 (!%p215_p2), %v356_v25, %v355_v24  ;;  %v358_v28 = vld [vmem:[%s769_s3 + $0x78] sm:$0xff] (!%p215_p2)  ;;  %v530_v30 = vld [vmem:[%s768_s2] ss:$0 sm:$0xff] (!%p215_p2) }
   0xc   : > { %v622_v29 = vpack.c.bf16 (!%p215_p2), %v358_v28, %v357_v27  ;;  %v532_v34 = vld [vmem:[%s770_s4] ss:$0 sm:$0xff] (!%p215_p2) }
   0xd   : > { %s774_s22 = smov (!%p246_p3, %s522_s22), 15  ;;  %605 = vmatpush3.bf16.msra.mxu1 %v604_v10 }
   0xe   : > { %s707_s11 = sshll.u32 %s774_s22, 3  ;;  %606 = vmatprep.subr.bf16.mxu1 %v643_v2 }
   0xf   : > { %s249_s14 = scalar_lea.vmem %s766_s0, %s707_s11  ;;  %s253_s22 = scalar_lea.vmem %s771_s5, %s707_s11 }
  0x10   : > { %v258_v13 = vld [vmem:[%s249_s14] sm:$0xff]  ;;  %s257_s27 = scalar_lea.vmem %s772_s6, %s707_s11 }
  0x11   : > { %560 = vmatmul.mubr.msk.f32.vlgmr.msra.gmra.mrb[0].mxu0 %vm268_vm1, %v258_v13  ;;  %608 = vmatpush3.bf16.msra.mxu1 %v607_v14 }
  0x12   : > { %609 = vmatprep.subr.bf16.mxu1 %v643_v2 }
  0x15   : > { %611 = vmatpush3.bf16.msra.mxu1 %v610_v17 }
  0x16   : > { %612 = vmatprep.subr.bf16.mxu1 %v643_v2 }
  0x19   : > { %614 = vmatpush3.bf16.msra.mxu1 %v613_v20 }
  0x1a   : > { %615 = vmatprep.subr.bf16.mxu1 %v643_v2 }
  0x1d   : > { %617 = vmatpush3.bf16.msra.mxu1 %v616_v23 }
  0x1e   : > { %618 = vmatprep.subr.bf16.mxu1 %v643_v2 }
  0x21   : > { %620 = vmatpush3.bf16.msra.mxu1 %v619_v26 }
  0x22   : > { %621 = vmatprep.subr.bf16.mxu1 %v643_v2 }
  0x25   : > { %623 = vmatpush3.bf16.msra.mxu1 %v622_v29 }
  0xe4   : > { %v338_v31 = vpop.f32.mrb[0].mxu0 }
  0xe5   : > { %v339_v32 = vadd.f32 %v530_v30, %v338_v31  ;;  %v561_v33 = vpop.f32.mrb[1].mxu0 }
  0xe7   : > { %342 = vst [vmem:[%s253_s22] sm:$0xff] %v339_v32  ;;  %595 = vmatmul.mubr.f32.vlgmr.msra.gmra.mrb[0].mxu1 %v339_v32 }
 0x1ba   : > { %v432_v35 = vpop.f32.mrb[0].mxu1 }
 0x1bb   : > { %v433_v36 = vadd.f32 %v532_v34, %v432_v35  ;;  %v596_v37 = vpop.f32.mrb[1].mxu1 }
 0x1bd   : > { %437 = vst.msk [vmem:[%s257_s27] sm:$0xff] %vm436_vm2, %v433_v36 }
 0x1be PF: > { %s17_s21 = sadd.s32 1, %s641_s21  }
 0x1bf   : > { %p14_p4 = scmp.ge.s32.totalorder %s17_s21, 18  }
 0x1c1   :  { %16 = sbr.rel (!%p14_p4) target bundleno = 1 (0x1), region = 82 }

</bundles_post_ra>
